<compile_context>
chip_gen: v7x
topology: tpu7x:2x2x1
jax: 0.10.0
libtpu: 0.0.40
codegen_flags: <defaults>
</compile_context>

<pallas_src>
from functools import partial

import jax
import jax.numpy as jnp
from jax.experimental import pallas as pl
from jax.experimental.pallas import tpu as pltpu

_LOG2E = 1.4426950408889634
_SEQ_ALIGN = 128                      # pad S to a multiple of this
_MiB = 1024 * 1024


def _round_up(n, m):
    return ((n + m - 1) // m) * m


def _largest_tile(n, candidates):
    for c in candidates:
        if n % c == 0:
            return c
    return n


def _vmem_limit(nbytes):
    # Explicit scoped-VMEM budget (default is only 32 MiB): 1.5x the static
    # estimate, floored at the default, capped at the largest physical VMEM.
    return int(min(128 * _MiB, max(32 * _MiB, int(nbytes * 1.5))))


# ----------------------------------------------------------------------------
# Kernel A: LayerNorm + QKV projection (bf16 MXU operands, f32 accumulation)
# ----------------------------------------------------------------------------
def _ln_qkv_kernel(x_ref, gamma_ref, beta_ref, wq_t_ref, wkv_t_ref,
                   q_ref, kv_ref, *, scale, eps):
    x = x_ref[0]                                            # (TS, D) f32

    # LayerNorm (biased variance, matches nn.LayerNorm); stats in f32.
    mean = jnp.mean(x, axis=-1, keepdims=True)
    xc = x - mean
    var = jnp.mean(xc * xc, axis=-1, keepdims=True)
    xn = xc * jax.lax.rsqrt(var + eps) * gamma_ref[0] + beta_ref[0]
    xn_b = xn.astype(jnp.bfloat16)

    # Two separate dots writing straight to their outputs: the full (TS, 3D)
    # f32 intermediate of the fused projection never exists in VMEM.
    q = jnp.dot(xn_b, wq_t_ref[...], preferred_element_type=jnp.float32)
    q_ref[0] = (q * scale).astype(q_ref.dtype)              # log2(e)/sqrt(hd) folded in
    kv = jnp.dot(xn_b, wkv_t_ref[...], preferred_element_type=jnp.float32)
    kv_ref[0] = kv.astype(kv_ref.dtype)                     # [K | V] packed


# ----------------------------------------------------------------------------
# Kernel B: flash-style causal attention + output projection
# grid = (B, num_q_tiles, num_kv_tiles); kv axis is the reduction
# ----------------------------------------------------------------------------
def _flash_attn_kernel(q_ref, kv_ref, wout_t_ref, o_ref,
                       m_ref, l_ref, acc_ref,
                       *, heads, head_dim, q_tile, kv_tile):
    qi = pl.program_id(1)
    ki = pl.program_id(2)
    num_kv = pl.num_programs(2)
    D = heads * head_dim

    q_start = qi * q_tile
    kv_start = ki * kv_tile

    @pl.when(ki == 0)
    def _init():
        m_ref[...] = jnp.full(m_ref.shape, -jnp.inf, m_ref.dtype)
        l_ref[...] = jnp.zeros(l_ref.shape, l_ref.dtype)
        acc_ref[...] = jnp.zeros(acc_ref.shape, acc_ref.dtype)

    def online_update(apply_mask):
        q_all = q_ref[0]       # (TQ, D)  bf16, already scaled by log2(e)/sqrt(hd)
        kv_all = kv_ref[0]     # (TK, 2D) bf16: [K | V]
        if apply_mask:
            row = q_start + jax.lax.broadcasted_iota(jnp.int32, (q_tile, kv_tile), 0)
            col = kv_start + jax.lax.broadcasted_iota(jnp.int32, (q_tile, kv_tile), 1)
            causal = row >= col

        # TODO(synk): for heads >= 8 with 256-tiles, switch to lax.fori_loop with
        # lane-aligned (head_dim padded to 128) slices to bound vreg live ranges.
        for h in range(heads):
            lo, hi = h * head_dim, (h + 1) * head_dim
            q = q_all[:, lo:hi]                 # (TQ, hd) bf16
            k = kv_all[:, lo:hi]                # (TK, hd) bf16
            v = kv_all[:, D + lo:D + hi]        # (TK, hd) bf16

            # q @ k^T via dot_general contraction (no explicit transpose).
            s = jax.lax.dot_general(q, k, (((1,), (1,)), ((), ())),
                                    preferred_element_type=jnp.float32)
            if apply_mask:
                s = jnp.where(causal, s, -jnp.inf)

            m_prev = m_ref[h]                                   # (TQ, 1) f32
            m_new = jnp.maximum(m_prev, jnp.max(s, axis=-1, keepdims=True))
            alpha = jnp.exp2(m_prev - m_new)                    # exp2-form softmax
            p = jnp.exp2(s - m_new)                             # (TQ, TK) f32
            l_ref[h] = alpha * l_ref[h] + jnp.sum(p, axis=-1, keepdims=True)
            acc_ref[h] = alpha * acc_ref[h] + jnp.dot(
                p.astype(jnp.bfloat16), v, preferred_element_type=jnp.float32)
            m_ref[h] = m_new

    # Tiles entirely above the causal diagonal are skipped outright; tiles
    # entirely below it run unmasked; only straddling tiles pay for the mask.
    interior = kv_start + kv_tile - 1 <= q_start
    straddle = jnp.logical_and(kv_start <= q_start + q_tile - 1,
                               kv_start + kv_tile - 1 > q_start)

    @pl.when(interior)
    def _interior():
        online_update(apply_mask=False)

    @pl.when(straddle)
    def _diagonal():
        online_update(apply_mask=True)

    @pl.when(ki == num_kv - 1)
    def _finalize():
        # Head-concat then ONE full-width matmul on the MXU (contraction K=D
        # instead of `heads` matmuls with K=head_dim).
        parts = []
        for h in range(heads):
            inv_l = pl.reciprocal(l_ref[h], approx=True)
            parts.append((acc_ref[h] * inv_l).astype(jnp.bfloat16))
        o_cat = jnp.concatenate(parts, axis=-1)                 # (TQ, D) bf16
        out = jnp.dot(o_cat, wout_t_ref[...], preferred_element_type=jnp.float32)
        o_ref[0] = out.astype(o_ref.dtype)


# ----------------------------------------------------------------------------
# Wrapper
# ----------------------------------------------------------------------------
def attention_layer(x, kparams, heads, attention_mask=None, *,
                    ln_tile=None, q_tile=None, kv_tile=None):
    # PyTorch's F.scaled_dot_product_attention rejects attn_mask together with
    # is_causal=True, so the only valid call has attention_mask=None.
    # TODO(synk): additive attn_mask path not implemented (invalid with is_causal=True).
    assert attention_mask is None

    B, S, D = x.shape
    assert D % heads == 0
    head_dim = D // heads
    # 1/sqrt(head_dim) and log2(e) folded into Q once -> exp2-form softmax.
    scale = _LOG2E / float(head_dim) ** 0.5

    gamma = kparams["ln_gamma"].reshape(1, D).astype(jnp.float32)
    beta = kparams["ln_beta"].reshape(1, D).astype(jnp.float32)
    wq_t = kparams["wq_t"]        # (D, D)   bf16, pre-transposed at init
    wkv_t = kparams["wkv_t"]      # (D, 2D)  bf16
    wout_t = kparams["w_out_t"]   # (D, D)   bf16

    # Pad S up to a multiple of 128 instead of shrinking tiles for awkward S.
    # Padded key rows sit after all real rows, so causal masking keeps them out
    # of every real query row; padded query rows are sliced off at the end.
    Sp = _round_up(S, _SEQ_ALIGN)
    x_p = x if Sp == S else jnp.pad(x, ((0, 0), (0, Sp - S), (0, 0)))

    # Decoupled tile sizes (kernel-A streaming tile vs attention q/kv tiles);
    # override per chip: v5e prefers 128, v6e can push kv_tile to 512.
    ts = ln_tile or _largest_tile(Sp, (512, 256, 128))
    tq = q_tile or _largest_tile(Sp, (256, 128))
    tk = kv_tile or _largest_tile(Sp, (256, 128))

    bf16 = 2
    xsz = x.dtype.itemsize

    # ---- kernel A: LayerNorm + QKV projection ----
    vmem_a = _vmem_limit(
        2 * ts * D * 4                         # x tile (double-buffered f32)
        + 2 * ts * D * bf16                    # Q out tile
        + 2 * ts * 2 * D * bf16                # KV out tile
        + 2 * (D * D + D * 2 * D) * bf16       # Wq^T / Wkv^T (double-buffered)
        + 4 * ts * 3 * D * 4)                  # f32 temporaries slack

    q_scaled, kv_packed = pl.pallas_call(
        partial(_ln_qkv_kernel, scale=scale, eps=1e-5),
        out_shape=(jax.ShapeDtypeStruct((B, Sp, D), jnp.bfloat16),
                   jax.ShapeDtypeStruct((B, Sp, 2 * D), jnp.bfloat16)),
        grid=(B, Sp // ts),
        in_specs=[
            pl.BlockSpec((1, ts, D), lambda b, si: (b, si, 0)),      # x
            pl.BlockSpec((1, D), lambda b, si: (0, 0)),              # ln gamma
            pl.BlockSpec((1, D), lambda b, si: (0, 0)),              # ln beta
            # TODO(synk): single-buffer the grid-invariant weights (pipeline_mode=pl.Buffered(1)) for large D.
            pl.BlockSpec((D, D), lambda b, si: (0, 0)),              # Wq^T
            pl.BlockSpec((D, 2 * D), lambda b, si: (0, 0)),          # Wkv^T
        ],
        out_specs=(
            pl.BlockSpec((1, ts, D), lambda b, si: (b, si, 0)),      # Q (scaled)
            pl.BlockSpec((1, ts, 2 * D), lambda b, si: (b, si, 0)),  # [K|V]
        ),
        compiler_params=pltpu.CompilerParams(
            dimension_semantics=("parallel", "parallel"),
            vmem_limit_bytes=vmem_a),
    )(x_p, gamma, beta, wq_t, wkv_t)

    # ---- kernel B: flash attention + output projection ----
    nq, nk = Sp // tq, Sp // tk

    def kv_index_map(b, qi, ki):
        # Clamp the kv block index to the last tile intersecting the causal
        # region: fully-masked tiles reuse the previous block -> no extra DMA.
        last = (qi * tq + tq - 1) // tk
        return (b, jnp.minimum(ki, last), 0)

    vmem_b = _vmem_limit(
        2 * tq * D * bf16                      # Q tile
        + 2 * tk * 2 * D * bf16                # KV tile
        + 2 * D * D * bf16                     # W_out^T (double-buffered)
        + 2 * tq * D * xsz                     # out tile
        + 2 * heads * tq * 128 * 4             # m / l scratch (lane padded)
        + heads * tq * max(head_dim, 128) * 4  # acc scratch (lane padded)
        + 4 * tq * tk * 4                      # score / prob temporaries
        + 3 * tq * D * 4)                      # concat + out-proj temporaries

    # TODO(synk): remap (qi,ki) to a compact lower-triangular grid via
    # PrefetchScalarGridSpec index tables to drop the skipped above-diagonal steps.
    out = pl.pallas_call(
        partial(_flash_attn_kernel, heads=heads, head_dim=head_dim,
                q_tile=tq, kv_tile=tk),
        out_shape=jax.ShapeDtypeStruct((B, Sp, D), x.dtype),
        grid=(B, nq, nk),
        in_specs=[
            pl.BlockSpec((1, tq, D), lambda b, qi, ki: (b, qi, 0)),  # Q tile
            pl.BlockSpec((1, tk, 2 * D), kv_index_map),              # KV tile
            pl.BlockSpec((D, D), lambda b, qi, ki: (0, 0)),          # W_out^T
        ],
        out_specs=pl.BlockSpec((1, tq, D), lambda b, qi, ki: (b, qi, 0)),
        scratch_shapes=[
            pltpu.VMEM((heads, tq, 1), jnp.float32),          # running max m
            pltpu.VMEM((heads, tq, 1), jnp.float32),          # running sum l
            pltpu.VMEM((heads, tq, head_dim), jnp.float32),   # running acc
        ],
        compiler_params=pltpu.CompilerParams(
            # batch & q axes "parallel" -> v7x megacore engages when B*nq >= 2.
            dimension_semantics=("parallel", "parallel", "arbitrary"),
            vmem_limit_bytes=vmem_b),
    )(q_scaled, kv_packed, wout_t)

    return out if Sp == S else out[:, :S, :]


# ----------------------------------------------------------------------------
# Pure-JAX f32 reference (silent correctness check)
# ----------------------------------------------------------------------------
def attention_layer_ref(x, params, heads):
    B, S, D = x.shape
    hd = D // heads
    eps = 1e-5
    mean = jnp.mean(x, axis=-1, keepdims=True)
    var = jnp.mean((x - mean) ** 2, axis=-1, keepdims=True)
    xn = (x - mean) / jnp.sqrt(var + eps) * params["ln_gamma"] + params["ln_beta"]
    proj = xn @ params["w_in"].T                                  # (B, S, 3D)
    q, k, v = jnp.split(proj, 3, axis=-1)

    def to_heads(t):
        return t.reshape(B, S, heads, hd).transpose(0, 2, 1, 3)   # (B, H, S, hd)

    q, k, v = to_heads(q), to_heads(k), to_heads(v)
    s = jnp.einsum("bhqd,bhkd->bhqk", q, k) / jnp.sqrt(hd).astype(x.dtype)
    causal = jnp.tril(jnp.ones((S, S), dtype=bool))
    s = jnp.where(causal, s, -jnp.inf)
    p = jax.nn.softmax(s, axis=-1)
    o = jnp.einsum("bhqk,bhkd->bhqd", p, v)
    o = o.transpose(0, 2, 1, 3).reshape(B, S, D)
    return o @ params["w_out"].T


# ----------------------------------------------------------------------------
# Parameter init (nn.Linear / nn.LayerNorm shapes) + one-time kernel weight prep
# ----------------------------------------------------------------------------
def init_params(key, dmodel):
    k1, k2 = jax.random.split(key)
    bound = 1.0 / (dmodel ** 0.5)
    return {
        "ln_gamma": jnp.ones((dmodel,), jnp.float32),
        "ln_beta": jnp.zeros((dmodel,), jnp.float32),
        "w_in": jax.random.uniform(k1, (3 * dmodel, dmodel), jnp.float32,
                                   -bound, bound),
        "w_out": jax.random.uniform(k2, (dmodel, dmodel), jnp.float32,
                                    -bound, bound),
    }


def prepare_kernel_params(params, dmodel):
    # One-time transpose / split / bf16 cast of the projection weights.
    w_in_t = params["w_in"].T                                  # (D, 3D)
    return {
        "ln_gamma": params["ln_gamma"].astype(jnp.float32),
        "ln_beta": params["ln_beta"].astype(jnp.float32),
        "wq_t": w_in_t[:, :dmodel].astype(jnp.bfloat16),       # (D, D)
        "wkv_t": w_in_t[:, dmodel:].astype(jnp.bfloat16),      # (D, 2D)
        "w_out_t": params["w_out"].T.astype(jnp.bfloat16),     # (D, D)
    }


if __name__ == "__main__":
    batch, seq, dmodel, heads = 2, 8, 32, 4

    key = jax.random.PRNGKey(0)
    kx, kp = jax.random.split(key)
    x = jax.random.normal(kx, (batch, seq, dmodel), jnp.float32)
    params = init_params(kp, dmodel)
    kparams = prepare_kernel_params(params, dmodel)

    out = attention_layer(x, kparams, heads, attention_mask=None)
    out = jax.block_until_ready(out)

    ref = attention_layer_ref(x, params, heads)
    assert out.shape == (batch, seq, dmodel)
    # bf16 MXU operands -> compare against the f32 reference with bf16 tolerance
    assert jnp.allclose(out, ref, atol=2e-2, rtol=2e-2), \
        float(jnp.max(jnp.abs(out - ref)))

    print("KERNEL_OK")
</pallas_src>

<mosaic_0001>
module attributes {stable_mosaic.version = 11 : i64} {
  func.func @_ln_qkv_kernel(%arg0: i32, %arg1: i32, %arg2: memref<1x128x32xf32, #tpu.memory_space<vmem>>, %arg3: memref<1x32xf32, #tpu.memory_space<vmem>>, %arg4: memref<1x32xf32, #tpu.memory_space<vmem>>, %arg5: memref<32x32xbf16, #tpu.memory_space<vmem>>, %arg6: memref<32x64xbf16, #tpu.memory_space<vmem>>, %arg7: memref<1x128x32xbf16, #tpu.memory_space<vmem>>, %arg8: memref<1x128x64xbf16, #tpu.memory_space<vmem>>) attributes {dimension_semantics = [#tpu.dimension_semantics<parallel>, #tpu.dimension_semantics<parallel>], iteration_bounds = array<i64: 2, 1>, scalar_prefetch = 0 : i64, scratch_operands = 0 : i64, tpu.core_type = #tpu.core_type<tc>, window_params = [{transform_indices = @transform_0, window_bounds = array<i64: 1, 128, 32>}, {pipeline_mode = #tpu.pipeline_mode<synchronous>, transform_indices = @transform_1, window_bounds = array<i64: 1, 32>}, {pipeline_mode = #tpu.pipeline_mode<synchronous>, transform_indices = @transform_2, window_bounds = array<i64: 1, 32>}, {pipeline_mode = #tpu.pipeline_mode<synchronous>, transform_indices = @transform_3, window_bounds = array<i64: 32, 32>}, {pipeline_mode = #tpu.pipeline_mode<synchronous>, transform_indices = @transform_4, window_bounds = array<i64: 32, 64>}, {transform_indices = @transform_5, window_bounds = array<i64: 1, 128, 32>}, {transform_indices = @transform_6, window_bounds = array<i64: 1, 128, 64>}]} {
    %c0 = arith.constant 0 : index
    %c0_0 = arith.constant 0 : index
    %c0_1 = arith.constant 0 : index
    %0 = vector.load %arg2[%c0, %c0_0, %c0_1] : memref<1x128x32xf32, #tpu.memory_space<vmem>>, vector<1x128x32xf32>
    %1 = vector.shape_cast %0 : vector<1x128x32xf32> to vector<128x32xf32>
    %cst = arith.constant dense<0.000000e+00> : vector<128xf32>
    %2 = vector.multi_reduction <add>, %1, %cst [1] : vector<128x32xf32> to vector<128xf32>
    %3 = vector.shape_cast %2 : vector<128xf32> to vector<128x1xf32>
    %cst_2 = arith.constant 3.200000e+01 : f32
    %4 = vector.broadcast %cst_2 : f32 to vector<128x1xf32>
    %5 = arith.divf %3, %4 : vector<128x1xf32>
    %6 = vector.broadcast %5 : vector<128x1xf32> to vector<128x32xf32>
    %7 = arith.subf %1, %6 : vector<128x32xf32>
    %8 = arith.mulf %7, %7 : vector<128x32xf32>
    %cst_3 = arith.constant dense<0.000000e+00> : vector<128xf32>
    %9 = vector.multi_reduction <add>, %8, %cst_3 [1] : vector<128x32xf32> to vector<128xf32>
    %10 = vector.shape_cast %9 : vector<128xf32> to vector<128x1xf32>
    %cst_4 = arith.constant 3.200000e+01 : f32
    %11 = vector.broadcast %cst_4 : f32 to vector<128x1xf32>
    %12 = arith.divf %10, %11 : vector<128x1xf32>
    %cst_5 = arith.constant 9.99999974E-6 : f32
    %13 = vector.broadcast %cst_5 : f32 to vector<128x1xf32>
    %14 = arith.addf %12, %13 : vector<128x1xf32>
    %15 = math.rsqrt %14 : vector<128x1xf32>
    %16 = vector.broadcast %15 : vector<128x1xf32> to vector<128x32xf32>
    %17 = arith.mulf %7, %16 : vector<128x32xf32>
    %c0_6 = arith.constant 0 : index
    %c0_7 = arith.constant 0 : index
    %18 = vector.load %arg3[%c0_6, %c0_7] : memref<1x32xf32, #tpu.memory_space<vmem>>, vector<1x32xf32>
    %19 = vector.shape_cast %18 : vector<1x32xf32> to vector<32xf32>
    %20 = vector.shape_cast %19 : vector<32xf32> to vector<1x32xf32>
    %21 = vector.broadcast %20 : vector<1x32xf32> to vector<128x32xf32>
    %22 = arith.mulf %17, %21 : vector<128x32xf32>
    %c0_8 = arith.constant 0 : index
    %c0_9 = arith.constant 0 : index
    %23 = vector.load %arg4[%c0_8, %c0_9] : memref<1x32xf32, #tpu.memory_space<vmem>>, vector<1x32xf32>
    %24 = vector.shape_cast %23 : vector<1x32xf32> to vector<32xf32>
    %25 = vector.shape_cast %24 : vector<32xf32> to vector<1x32xf32>
    %26 = vector.broadcast %25 : vector<1x32xf32> to vector<128x32xf32>
    %27 = arith.addf %22, %26 : vector<128x32xf32>
    %28 = arith.truncf %27 : vector<128x32xf32> to vector<128x32xbf16>
    %c0_10 = arith.constant 0 : index
    %c0_11 = arith.constant 0 : index
    %29 = vector.load %arg5[%c0_10, %c0_11] : memref<32x32xbf16, #tpu.memory_space<vmem>>, vector<32x32xbf16>
    %cst_12 = arith.constant dense<0.000000e+00> : vector<128x32xf32>
    %30 = tpu.matmul %28, %29, %cst_12 {dimension_numbers = #tpu.dot_dimension_numbers<[1], [0], [0], [1], [0, 0, 1, 1], [], []>} : vector<128x32xbf16>, vector<32x32xbf16>, vector<128x32xf32> -> vector<128x32xf32>
    %cst_13 = arith.constant 0.510069728 : f32
    %31 = vector.broadcast %cst_13 : f32 to vector<128x32xf32>
    %32 = arith.mulf %30, %31 : vector<128x32xf32>
    %33 = arith.truncf %32 : vector<128x32xf32> to vector<128x32xbf16>
    %c0_14 = arith.constant 0 : index
    %c0_15 = arith.constant 0 : index
    %c0_16 = arith.constant 0 : index
    %34 = vector.load %arg7[%c0_14, %c0_15, %c0_16] : memref<1x128x32xbf16, #tpu.memory_space<vmem>>, vector<1x128x32xbf16>
    %35 = vector.shape_cast %34 : vector<1x128x32xbf16> to vector<128x32xbf16>
    %36 = vector.shape_cast %33 : vector<128x32xbf16> to vector<1x128x32xbf16>
    tpu.vector_store %arg7[%c0_14, %c0_15, %c0_16], %36 {strides = array<i32>} : memref<1x128x32xbf16, #tpu.memory_space<vmem>>, vector<1x128x32xbf16>,
    %c0_17 = arith.constant 0 : index
    %c0_18 = arith.constant 0 : index
    %37 = vector.load %arg6[%c0_17, %c0_18] : memref<32x64xbf16, #tpu.memory_space<vmem>>, vector<32x64xbf16>
    %cst_19 = arith.constant dense<0.000000e+00> : vector<128x64xf32>
    %38 = tpu.matmul %28, %37, %cst_19 {dimension_numbers = #tpu.dot_dimension_numbers<[1], [0], [0], [1], [0, 0, 1, 1], [], []>} : vector<128x32xbf16>, vector<32x64xbf16>, vector<128x64xf32> -> vector<128x64xf32>
    %39 = arith.truncf %38 : vector<128x64xf32> to vector<128x64xbf16>
    %c0_20 = arith.constant 0 : index
    %c0_21 = arith.constant 0 : index
    %c0_22 = arith.constant 0 : index
    %40 = vector.load %arg8[%c0_20, %c0_21, %c0_22] : memref<1x128x64xbf16, #tpu.memory_space<vmem>>, vector<1x128x64xbf16>
    %41 = vector.shape_cast %40 : vector<1x128x64xbf16> to vector<128x64xbf16>
    %42 = vector.shape_cast %39 : vector<128x64xbf16> to vector<1x128x64xbf16>
    tpu.vector_store %arg8[%c0_20, %c0_21, %c0_22], %42 {strides = array<i32>} : memref<1x128x64xbf16, #tpu.memory_space<vmem>>, vector<1x128x64xbf16>,
    return
  }
  func.func @transform_0(%arg0: i32, %arg1: i32) -> (i32, i32, i32) {
    %c0_i32 = arith.constant 0 : i32
    %c0_i32_0 = arith.constant 0 : i32
    return %arg0, %arg1, %c0_i32 : i32, i32, i32
  }
  func.func @transform_1(%arg0: i32, %arg1: i32) -> (i32, i32) {
    %c0_i32 = arith.constant 0 : i32
    %c0_i32_0 = arith.constant 0 : i32
    %c0_i32_1 = arith.constant 0 : i32
    return %c0_i32, %c0_i32_0 : i32, i32
  }
  func.func @transform_2(%arg0: i32, %arg1: i32) -> (i32, i32) {
    %c0_i32 = arith.constant 0 : i32
    %c0_i32_0 = arith.constant 0 : i32
    %c0_i32_1 = arith.constant 0 : i32
    return %c0_i32, %c0_i32_0 : i32, i32
  }
  func.func @transform_3(%arg0: i32, %arg1: i32) -> (i32, i32) {
    %c0_i32 = arith.constant 0 : i32
    %c0_i32_0 = arith.constant 0 : i32
    %c0_i32_1 = arith.constant 0 : i32
    return %c0_i32, %c0_i32_0 : i32, i32
  }
  func.func @transform_4(%arg0: i32, %arg1: i32) -> (i32, i32) {
    %c0_i32 = arith.constant 0 : i32
    %c0_i32_0 = arith.constant 0 : i32
    %c0_i32_1 = arith.constant 0 : i32
    return %c0_i32, %c0_i32_0 : i32, i32
  }
  func.func @transform_5(%arg0: i32, %arg1: i32) -> (i32, i32, i32) {
    %c0_i32 = arith.constant 0 : i32
    %c0_i32_0 = arith.constant 0 : i32
    return %arg0, %arg1, %c0_i32 : i32, i32, i32
  }
  func.func @transform_6(%arg0: i32, %arg1: i32) -> (i32, i32, i32) {
    %c0_i32 = arith.constant 0 : i32
    %c0_i32_0 = arith.constant 0 : i32
    return %arg0, %arg1, %c0_i32 : i32, i32, i32
  }
}

</mosaic_0001>

<bundles_post_ra>
// kernel: tpu_custom_call.1
= control target key start
LH: loop header
LB: loop body
LE: loop exit
PB: predicated region body
PF: predicated region fallthrough
CT: control target
= control target key end

     0   :  { %s1442_s21 = smov 0   ;;  %s1444_s22 = smov 0   ;;  %s1790_s0 = inlined_call_operand.vmem [shape: f32[2,128,32], index: 0, kind: input, shape index: {}]   ;;  %s1791_s1 = inlined_call_operand.vmem [shape: f32[1,32], index: 1, kind: input, shape index: {}]   ;;  %s1792_s2 = inlined_call_operand.vmem [shape: f32[1,32], index: 2, kind: input, shape index: {}]   ;;  %s1793_s3 = inlined_call_operand.vmem [shape: bf16[32,32], index: 3, kind: input, shape index: {}]   ;;  %s1794_s4 = inlined_call_operand.vmem [shape: bf16[32,64], index: 4, kind: input, shape index: {}]   ;;  %s1795_s5 = inlined_call_operand.vmem [shape: bf16[2,128,32], index: 5, kind: output, shape index: {0}]   ;;  %s1796_s6 = inlined_call_operand.vmem [shape: bf16[2,128,64], index: 6, kind: output, shape index: {1}]  }
   0x1   :  { %s1446_s23 = smov 0  }
   0x2 LB: > { %s29_s24 = sadd.s32 1, %s1401_s22  ;;  %p1165_p0 = scmp.ge.s32.totalorder %s1405_s23, 1  ;;  %s1405_s23 = sphi %s1446_s23, %s17_s23   ;;  %s1401_s22 = sphi %s1444_s22, %s1798_s22   ;;  %s1397_s21 = sphi %s1442_s21, %s1797_s21  }
   0x3   : > { %p31_p1 = scmp.ge.s32.totalorder %s29_s24, 2  ;;  %p238_p2 = scmp.lt.s32.totalorder %s1405_s23, 3 }
   0x5   : > { %s1800_s24 = smov (%p31_p1, %s29_s24), 0  ;;  %p239_p3 = pnand %p1165_p0, %p238_p2 }
   0x6   : > { %p286_p4 = scmp.lt.s32.totalorder (!%p239_p3), %s1397_s21, 1  ;;  %vm332_vm0 = vcmask (!%p239_p3), 261120   ;;  %vm1007_vm1 = vcmask (!%p239_p3), 519168   ;;  %vm813_vm2 = vcmask (!%p239_p3), 257024  }
   0x7   : > { %242 = sbr.rel (%p239_p3) target bundleno = 585 (0x249), region = 40 }
   0xe   : > { %s1802_s21 = smov (!%p286_p4, %s1397_s21), 1 }
   0xf   : > { %s1228_s25 = sshll.u32 %s1802_s21, 7  ;;  %s1229_s17 = sshll.u32 %s1802_s21, 6 }
  0x10   : > { %s1466_s28 = scalar_lea.vmem %s1790_s0, %s1228_s25  ;;  %s1710_s20 = scalar_lea.vmem %s1796_s6, %s1229_s17 }
  0x11   : > { %v316_v0 = vld [vmem:[%s1466_s28] sm:$0xff]  ;;  %v318_v1 = vld [vmem:[%s1466_s28 + $0x10] sm:$0xff]  ;;  %v317_v2 = vld [vmem:[%s1466_s28 + $0x8] sm:$0xff]  ;;  %s1715_s27 = scalar_lea.vmem %s1795_s5, %s1229_s17 }
  0x12   : > { %v333_v3 = vsel %vm332_vm0, %v316_v0, 0.0  ;;  %v339_v4 = vsel %vm332_vm0, %v318_v1, 0.0  ;;  %v319_v5 = vld [vmem:[%s1466_s28 + $0x18] sm:$0xff]  ;;  %v336_v6 = vsel %vm332_vm0, %v317_v2, 0.0  ;;  %v320_v8 = vld [vmem:[%s1466_s28 + $0x20] sm:$0xff]  ;;  %v321_v9 = vld [vmem:[%s1466_s28 + $0x28] sm:$0xff] }
  0x13   : > { %334 = vadd.xlane.f32.xlu0 %v333_v3  ;;  %340 = vadd.xlane.f32.xlu1 %v339_v4  ;;  %v342_v7 = vsel %vm332_vm0, %v319_v5, 0.0  ;;  %v345_v10 = vsel %vm332_vm0, %v320_v8, 0.0  ;;  %v348_v11 = vsel %vm332_vm0, %v321_v9, 0.0  ;;  %v1481_v12 = vld [vmem:[%s1466_s28 + $0x30] sm:$0xff]  ;;  %v1484_v13 = vld [vmem:[%s1466_s28 + $0x38] sm:$0xff]  ;;  %v1491_v16 = vld [vmem:[%s1466_s28 + $0x40] sm:$0xff] }
  0x14   : > { %v351_v14 = vsel %vm332_vm0, %v1481_v12, 0.0  ;;  %v354_v15 = vsel %vm332_vm0, %v1484_v13, 0.0  ;;  %v1494_v17 = vld [vmem:[%s1466_s28 + $0x48] sm:$0xff]  ;;  %v357_v18 = vsel %vm332_vm0, %v1491_v16, 0.0  ;;  %v1501_v20 = vld [vmem:[%s1466_s28 + $0x50] sm:$0xff]  ;;  %v1504_v21 = vld [vmem:[%s1466_s28 + $0x58] sm:$0xff] }
  0x15   : > { %v360_v19 = vsel %vm332_vm0, %v1494_v17, 0.0  ;;  %v363_v22 = vsel %vm332_vm0, %v1501_v20, 0.0  ;;  %v366_v23 = vsel %vm332_vm0, %v1504_v21, 0.0  ;;  %v1511_v24 = vld [vmem:[%s1466_s28 + $0x60] sm:$0xff]  ;;  %v1514_v25 = vld [vmem:[%s1466_s28 + $0x68] sm:$0xff]  ;;  %v1521_v28 = vld [vmem:[%s1466_s28 + $0x70] sm:$0xff] }
  0x16   : > { %v369_v26 = vsel %vm332_vm0, %v1511_v24, 0.0  ;;  %v372_v27 = vsel %vm332_vm0, %v1514_v25, 0.0  ;;  %v1524_v29 = vld [vmem:[%s1466_s28 + $0x78] sm:$0xff]  ;;  %v375_v30 = vsel %vm332_vm0, %v1521_v28, 0.0 }
  0x17   : > { %337 = vadd.xlane.f32.xlu0 %v336_v6  ;;  %343 = vadd.xlane.f32.xlu1 %v342_v7  ;;  %v378_v31 = vsel %vm332_vm0, %v1524_v29, 0.0 }
  0x1b   : > { %346 = vadd.xlane.f32.xlu0 %v345_v10  ;;  %349 = vadd.xlane.f32.xlu1 %v348_v11 }
  0x1f   : > { %352 = vadd.xlane.f32.xlu0 %v351_v14  ;;  %355 = vadd.xlane.f32.xlu1 %v354_v15 }
  0x23   : > { %358 = vadd.xlane.f32.xlu0 %v357_v18  ;;  %361 = vadd.xlane.f32.xlu1 %v360_v19 }
  0x27   : > { %364 = vadd.xlane.f32.xlu0 %v363_v22  ;;  %367 = vadd.xlane.f32.xlu1 %v366_v23 }
  0x2b   : > { %370 = vadd.xlane.f32.xlu0 %v369_v26  ;;  %373 = vadd.xlane.f32.xlu1 %v372_v27 }
  0x2f   : > { %376 = vadd.xlane.f32.xlu0 %v375_v30  ;;  %379 = vadd.xlane.f32.xlu1 %v378_v31 }
  0xa0   : > { %v335_v32 = vpop.xlane.xlu0 %334  ;;  %v341_v33 = vpop.xlane.xlu1 %340 }
  0xa1   : > { %v382_v34 = vmul.f32 0.03125, %v335_v32  ;;  %v384_v35 = vmul.f32 0.03125, %v341_v33 }
  0xa3   : > { %v1530_v36 = vsub.f32 %v316_v0, %v382_v34  ;;  %v1532_v37 = vsub.f32 %v318_v1, %v384_v35 }
  0xa4   : > { %v338_v38 = vpop.xlane.xlu0 %337  ;;  %v344_v39 = vpop.xlane.xlu1 %343 }
  0xa5   : > { %v383_v40 = vmul.f32 0.03125, %v338_v38  ;;  %v385_v41 = vmul.f32 0.03125, %v344_v39  ;;  %v414_v42 = vmul.f32 %v1530_v36, %v1530_v36  ;;  %v416_v43 = vmul.f32 %v1532_v37, %v1532_v37 }
  0xa7   : > { %v1538_v44 = vsub.f32 %v317_v2, %v383_v40  ;;  %v1540_v45 = vsub.f32 %v319_v5, %v385_v41  ;;  %v430_v46 = vsel %vm332_vm0, %v414_v42, 0.0  ;;  %v436_v49 = vsel %vm332_vm0, %v416_v43, 0.0 }
  0xa8   : > { %431 = vadd.xlane.f32.xlu0 %v430_v46  ;;  %v347_v47 = vpop.xlane.xlu0 %346  ;;  %v350_v48 = vpop.xlane.xlu1 %349 }
  0xa9   : > { %v386_v50 = vmul.f32 0.03125, %v347_v47  ;;  %v387_v51 = vmul.f32 0.03125, %v350_v48  ;;  %v415_v52 = vmul.f32 %v1538_v44, %v1538_v44  ;;  %v417_v53 = vmul.f32 %v1540_v45, %v1540_v45 }
  0xab   : > { %v1548_v54 = vsub.f32 %v320_v8, %v386_v50  ;;  %v1550_v55 = vsub.f32 %v321_v9, %v387_v51  ;;  %v433_v56 = vsel %vm332_vm0, %v415_v52, 0.0  ;;  %v439_v59 = vsel %vm332_vm0, %v417_v53, 0.0  ;;  %v1348_v53 = vld [vmem:[%s1794_s4] sm:$0xff]  }
  0xac   : > { %437 = vadd.xlane.f32.xlu0 %v436_v49  ;;  %434 = vadd.xlane.f32.xlu1 %v433_v56  ;;  %v353_v57 = vpop.xlane.xlu0 %352  ;;  %v356_v58 = vpop.xlane.xlu1 %355  ;;  %v1349_v56 = vld [vmem:[%s1793_s3 + $0x8] sm:$0xff]  }
  0xad   : > { %v388_v60 = vmul.f32 0.03125, %v353_v57  ;;  %v389_v61 = vmul.f32 0.03125, %v356_v58  ;;  %v418_v62 = vmul.f32 %v1548_v54, %v1548_v54  ;;  %v419_v63 = vmul.f32 %v1550_v55, %v1550_v55  ;;  %1303 = vmatprep.subr.bf16.mxu1 %v1348_v53  ;;  %v1350_v57 = vld [vmem:[%s1794_s4 + $0x8] sm:$0xff]  }
  0xae   : > { %1304 = vmatpush3.bf16.msra.mxu1 %v1348_v53 }
  0xaf   : > { %v1559_v0 = vsub.f32 %v1481_v12, %v388_v60  ;;  %v1562_v1 = vsub.f32 %v1484_v13, %v389_v61  ;;  %v442_v2 = vsel %vm332_vm0, %v418_v62, 0.0  ;;  %v445_v5 = vsel %vm332_vm0, %v419_v63, 0.0  ;;  %1305 = vmatprep.subr.bf16.mxu1 %v1350_v57 }
  0xb0   : > { %440 = vadd.xlane.f32.xlu1 %v439_v59  ;;  %443 = vadd.xlane.f32.xlu0 %v442_v2  ;;  %v359_v3 = vpop.xlane.xlu0 %358  ;;  %v362_v4 = vpop.xlane.xlu1 %361 }
  0xb1   : > { %v390_v6 = vmul.f32 0.03125, %v359_v3  ;;  %v391_v7 = vmul.f32 0.03125, %v362_v4  ;;  %v420_v8 = vmul.f32 %v1559_v0, %v1559_v0  ;;  %v421_v9 = vmul.f32 %v1562_v1, %v1562_v1 }
  0xb2   : > { %1306 = vmatpush3.bf16.msra.mxu1 %v1350_v57 }
  0xb3   : > { %v1571_v10 = vsub.f32 %v1491_v16, %v390_v6  ;;  %v1574_v11 = vsub.f32 %v1494_v17, %v391_v7  ;;  %v448_v12 = vsel %vm332_vm0, %v420_v8, 0.0  ;;  %v451_v15 = vsel %vm332_vm0, %v421_v9, 0.0 }
  0xb4   : > { %446 = vadd.xlane.f32.xlu1 %v445_v5  ;;  %449 = vadd.xlane.f32.xlu0 %v448_v12  ;;  %v365_v13 = vpop.xlane.xlu0 %364  ;;  %v368_v14 = vpop.xlane.xlu1 %367 }
  0xb5   : > { %v392_v18 = vmul.f32 0.03125, %v365_v13  ;;  %v393_v19 = vmul.f32 0.03125, %v368_v14  ;;  %v422_v22 = vmul.f32 %v1571_v10, %v1571_v10  ;;  %v423_v16 = vmul.f32 %v1574_v11, %v1574_v11 }
  0xb7   : > { %v1583_v23 = vsub.f32 %v1501_v20, %v392_v18  ;;  %v1586_v17 = vsub.f32 %v1504_v21, %v393_v19  ;;  %v454_v26 = vsel %vm332_vm0, %v422_v22, 0.0  ;;  %v457_v31 = vsel %vm332_vm0, %v423_v16, 0.0 }
  0xb8   : > { %452 = vadd.xlane.f32.xlu1 %v451_v15  ;;  %455 = vadd.xlane.f32.xlu0 %v454_v26  ;;  %v371_v27 = vpop.xlane.xlu0 %370  ;;  %v374_v30 = vpop.xlane.xlu1 %373 }
  0xb9   : > { %v394_v32 = vmul.f32 0.03125, %v371_v27  ;;  %v395_v33 = vmul.f32 0.03125, %v374_v30  ;;  %v424_v34 = vmul.f32 %v1583_v23, %v1583_v23  ;;  %v425_v20 = vmul.f32 %v1586_v17, %v1586_v17 }
  0xbb   : > { %v1595_v35 = vsub.f32 %v1511_v24, %v394_v32  ;;  %v1598_v21 = vsub.f32 %v1514_v25, %v395_v33  ;;  %v460_v38 = vsel %vm332_vm0, %v424_v34, 0.0  ;;  %v463_v41 = vsel %vm332_vm0, %v425_v20, 0.0  ;;  %v1636_v33 = vld [vmem:[%s1791_s1] ss:$0 sm:$0xff] }
  0xbc   : > { %458 = vadd.xlane.f32.xlu1 %v457_v31  ;;  %461 = vadd.xlane.f32.xlu0 %v460_v38  ;;  %v377_v39 = vpop.xlane.xlu0 %376  ;;  %v380_v40 = vpop.xlane.xlu1 %379 }
  0xbd   : > { %v396_v42 = vmul.f32 0.03125, %v377_v39  ;;  %v397_v43 = vmul.f32 0.03125, %v380_v40  ;;  %v426_v46 = vmul.f32 %v1595_v35, %v1595_v35  ;;  %v427_v24 = vmul.f32 %v1598_v21, %v1598_v21 }
  0xbf   : > { %v1607_v47 = vsub.f32 %v1521_v28, %v396_v42  ;;  %v1610_v25 = vsub.f32 %v1524_v29, %v397_v43  ;;  %v466_v48 = vsel %vm332_vm0, %v426_v46, 0.0  ;;  %v469_v49 = vsel %vm332_vm0, %v427_v24, 0.0  ;;  %v1347_v29 = vld [vmem:[%s1793_s3] sm:$0xff]  }
  0xc0   : > { %464 = vadd.xlane.f32.xlu1 %v463_v41  ;;  %467 = vadd.xlane.f32.xlu0 %v466_v48  ;;  %v1644_v48 = vld [vmem:[%s1792_s2] ss:$0 sm:$0xff] }
  0xc1   : > { %v428_v50 = vmul.f32 %v1607_v47, %v1607_v47  ;;  %v429_v51 = vmul.f32 %v1610_v25, %v1610_v25  ;;  %1283 = vmatprep.subr.bf16.mxu0 %v1347_v29 }
  0xc2   : > { %1284 = vmatpush3.bf16.msra.mxu0 %v1347_v29 }
  0xc3   : > { %v472_v52 = vsel %vm332_vm0, %v428_v50, 0.0  ;;  %v475_v28 = vsel %vm332_vm0, %v429_v51, 0.0  ;;  %1285 = vmatprep.subr.bf16.mxu0 %v1349_v56 }
  0xc4   : > { %470 = vadd.xlane.f32.xlu1 %v469_v49  ;;  %473 = vadd.xlane.f32.xlu0 %v472_v52 }
  0xc6   : > { %1286 = vmatpush3.bf16.msra.mxu0 %v1349_v56 }
  0xc8   : > { %476 = vadd.xlane.f32.xlu1 %v475_v28 }
 0x135   : > { %v432_v58 = vpop.xlane.xlu0 %431 }
 0x136   : > { %v478_v59 = vmul.f32 0.03125, %v432_v58 }
 0x138   : > { %v494_v60 = vadd.f32 1e-05, %v478_v59 }
 0x139   : > { %v435_v61 = vpop.xlane.xlu1 %434  ;;  %v438_v62 = vpop.xlane.xlu0 %437 }
 0x13a   : > { %1351 = vrsqrt.f32 %v494_v60  ;;  %v479_v63 = vmul.f32 0.03125, %v435_v61  ;;  %v480_v2 = vmul.f32 0.03125, %v438_v62 }
 0x13c   : > { %v495_v3 = vadd.f32 1e-05, %v479_v63  ;;  %v496_v4 = vadd.f32 1e-05, %v480_v2 }
 0x13d   : > { %v441_v5 = vpop.xlane.xlu1 %440  ;;  %v444_v6 = vpop.xlane.xlu0 %443 }
 0x13e   : > { %1353 = vrsqrt.f32 %v495_v3  ;;  %v481_v7 = vmul.f32 0.03125, %v441_v5  ;;  %v482_v8 = vmul.f32 0.03125, %v444_v6 }
 0x13f   : > { %1355 = vrsqrt.f32 %v496_v4 }
 0x140   : > { %v497_v9 = vadd.f32 1e-05, %v481_v7  ;;  %v498_v12 = vadd.f32 1e-05, %v482_v8 }
 0x141   : > { %v447_v13 = vpop.xlane.xlu1 %446  ;;  %v450_v14 = vpop.xlane.xlu0 %449 }
 0x142   : > { %1357 = vrsqrt.f32 %v497_v9  ;;  %v483_v15 = vmul.f32 0.03125, %v447_v13  ;;  %v484_v18 = vmul.f32 0.03125, %v450_v14 }
 0x143   : > { %1359 = vrsqrt.f32 %v498_v12 }
 0x144   : > { %v1352_v19 = vpop.eup %1351  ;;  %v499_v22 = vadd.f32 1e-05, %v483_v15  ;;  %v500_v16 = vadd.f32 1e-05, %v484_v18 }
 0x145   : > { %v453_v26 = vpop.xlane.xlu1 %452  ;;  %v456_v27 = vpop.xlane.xlu0 %455  ;;  %v526_v30 = vmul.f32 %v1352_v19, %v1530_v36 }
 0x146   : > { %1361 = vrsqrt.f32 %v499_v22  ;;  %v485_v31 = vmul.f32 0.03125, %v453_v26  ;;  %v486_v32 = vmul.f32 0.03125, %v456_v27 }
 0x147   : > { %1363 = vrsqrt.f32 %v500_v16  ;;  %v549_v43 = vmul.f32 %v1636_v33, %v526_v30 }
 0x148   : > { %v1354_v34 = vpop.eup %1353  ;;  %v501_v20 = vadd.f32 1e-05, %v485_v31  ;;  %v502_v38 = vadd.f32 1e-05, %v486_v32 }
 0x149   : > { %v1356_v39 = vpop.eup %1355  ;;  %v459_v40 = vpop.xlane.xlu1 %458  ;;  %v527_v42 = vmul.f32 %v1354_v34, %v1538_v44 }
 0x14a   : > { %v462_v41 = vpop.xlane.xlu0 %461  ;;  %v528_v36 = vmul.f32 %v1356_v39, %v1532_v37  ;;  %1365 = vrsqrt.f32 %v501_v20  ;;  %v487_v46 = vmul.f32 0.03125, %v459_v40  ;;  %v572_v37 = vadd.f32 %v1644_v48, %v549_v43 }
 0x14b   : > { %v488_v24 = vmul.f32 0.03125, %v462_v41  ;;  %1367 = vrsqrt.f32 %v502_v38  ;;  %v550_v49 = vmul.f32 %v1636_v33, %v527_v42 }
 0x14c   : > { %v1358_v50 = vpop.eup %1357  ;;  %v503_v51 = vadd.f32 1e-05, %v487_v46  ;;  %v551_v57 = vmul.f32 %v1636_v33, %v528_v36 }
 0x14d   : > { %v504_v52 = vadd.f32 1e-05, %v488_v24  ;;  %v1360_v28 = vpop.eup %1359  ;;  %v529_v44 = vmul.f32 %v1358_v50, %v1540_v45  ;;  %v465_v29 = vpop.xlane.xlu1 %464  ;;  %v573_v56 = vadd.f32 %v1644_v48, %v550_v49 }
 0x14e   : > { %v468_v53 = vpop.xlane.xlu0 %467  ;;  %v530_v58 = vmul.f32 %v1360_v28, %v1548_v54  ;;  %1369 = vrsqrt.f32 %v503_v51  ;;  %v489_v59 = vmul.f32 0.03125, %v465_v29  ;;  %v574_v7 = vadd.f32 %v1644_v48, %v551_v57 }
 0x14f   : > { %v490_v60 = vmul.f32 0.03125, %v468_v53  ;;  %1371 = vrsqrt.f32 %v504_v52  ;;  %v588_v61 = vpack.c.bf16 %v573_v56, %v572_v37  ;;  %v552_v62 = vmul.f32 %v1636_v33, %v529_v44 }
 0x150   : > { %v1362_v63 = vpop.eup %1361  ;;  %v505_v2 = vadd.f32 1e-05, %v489_v59  ;;  %v553_v3 = vmul.f32 %v1636_v33, %v530_v58 }
 0x151   : > { %v506_v45 = vadd.f32 1e-05, %v490_v60  ;;  %v1364_v4 = vpop.eup %1363  ;;  %v531_v5 = vmul.f32 %v1362_v63, %v1550_v55  ;;  %v471_v6 = vpop.xlane.xlu1 %470  ;;  %1287 = vmatprep.mubr.msk.bf16.mxu0 %vm332_vm0, %v588_v61  ;;  %1307 = vmatprep.mubr.msk.bf16.mxu1 %vm332_vm0, %v588_v61  ;;  %v575_v8 = vadd.f32 %v1644_v48, %v552_v62 }
 0x152   : > { %v474_v54 = vpop.xlane.xlu0 %473  ;;  %v532_v9 = vmul.f32 %v1364_v4, %v1559_v0  ;;  %1373 = vrsqrt.f32 %v505_v2  ;;  %v491_v12 = vmul.f32 0.03125, %v471_v6  ;;  %v576_v22 = vadd.f32 %v1644_v48, %v553_v3 }
 0x153   : > { %v492_v13 = vmul.f32 0.03125, %v474_v54  ;;  %1375 = vrsqrt.f32 %v506_v45  ;;  %v589_v14 = vpack.c.bf16 %v575_v8, %v574_v7  ;;  %v554_v15 = vmul.f32 %v1636_v33, %v531_v5 }
 0x154   : > { %v1366_v55 = vpop.eup %1365  ;;  %v507_v18 = vadd.f32 1e-05, %v491_v12  ;;  %v555_v30 = vmul.f32 %v1636_v33, %v532_v9 }
 0x155   : > { %v508_v19 = vadd.f32 1e-05, %v492_v13  ;;  %v1368_v16 = vpop.eup %1367  ;;  %v533_v26 = vmul.f32 %v1366_v55, %v1562_v1  ;;  %v477_v27 = vpop.xlane.xlu1 %476  ;;  %1288 = vmatmul.mubr.msk.bf16.vlgmr.msra.gmra.mrb[0].mxu0 %vm332_vm0, %v589_v14  ;;  %1308 = vmatmul.mubr.msk.bf16.vlgmr.msra.gmra.mrb[0].mxu1 %vm332_vm0, %v589_v14  ;;  %v577_v0 = vadd.f32 %v1644_v48, %v554_v15 }
 0x156   : > { %v534_v31 = vmul.f32 %v1368_v16, %v1571_v10  ;;  %1377 = vrsqrt.f32 %v507_v18  ;;  %v493_v32 = vmul.f32 0.03125, %v477_v27  ;;  %v578_v42 = vadd.f32 %v1644_v48, %v555_v30 }
 0x157   : > { %1379 = vrsqrt.f32 %v508_v19  ;;  %v590_v34 = vpack.c.bf16 %v577_v0, %v576_v22  ;;  %v556_v20 = vmul.f32 %v1636_v33, %v533_v26 }
 0x158   : > { %v1370_v38 = vpop.eup %1369  ;;  %v509_v39 = vadd.f32 1e-05, %v493_v32  ;;  %v557_v1 = vmul.f32 %v1636_v33, %v534_v31 }
 0x159   : > { %v1372_v40 = vpop.eup %1371  ;;  %v535_v41 = vmul.f32 %v1370_v38, %v1574_v11  ;;  %1291 = vmatprep.mubr.msk.bf16.mxu0 %vm332_vm0, %v590_v34  ;;  %1311 = vmatprep.mubr.msk.bf16.mxu1 %vm332_vm0, %v590_v34  ;;  %v579_v10 = vadd.f32 %v1644_v48, %v556_v20 }
 0x15a   : > { %v536_v43 = vmul.f32 %v1372_v40, %v1583_v23  ;;  %1381 = vrsqrt.f32 %v509_v39  ;;  %v580_v49 = vadd.f32 %v1644_v48, %v557_v1 }
 0x15b   : > { %v591_v36 = vpack.c.bf16 %v579_v10, %v578_v42  ;;  %v558_v46 = vmul.f32 %v1636_v33, %v535_v41 }
 0x15c   : > { %v1374_v24 = vpop.eup %1373  ;;  %v559_v52 = vmul.f32 %v1636_v33, %v536_v43 }
 0x15d   : > { %v1376_v50 = vpop.eup %1375  ;;  %v537_v11 = vmul.f32 %v1374_v24, %v1586_v17  ;;  %1292 = vmatmul.mubr.msk.bf16.gmra.mrb[4].mxu0 %vm332_vm0, %v591_v36  ;;  %1312 = vmatmul.mubr.msk.bf16.gmra.mrb[4].mxu1 %vm332_vm0, %v591_v36  ;;  %v581_v51 = vadd.f32 %v1644_v48, %v558_v46 }
 0x15e   : > { %v538_v23 = vmul.f32 %v1376_v50, %v1595_v35  ;;  %v582_v17 = vadd.f32 %v1644_v48, %v559_v52 }
 0x15f   : > { %v592_v28 = vpack.c.bf16 %v581_v51, %v580_v49  ;;  %v560_v44 = vmul.f32 %v1636_v33, %v537_v11 }
 0x160   : > { %v1378_v29 = vpop.eup %1377  ;;  %v561_v53 = vmul.f32 %v1636_v33, %v538_v23 }
 0x161   : > { %v1380_v37 = vpop.eup %1379  ;;  %v539_v56 = vmul.f32 %v1378_v29, %v1598_v21  ;;  %1295 = vmatprep.mubr.msk.bf16.mxu0 %vm332_vm0, %v592_v28  ;;  %1315 = vmatprep.mubr.msk.bf16.mxu1 %vm332_vm0, %v592_v28  ;;  %v583_v57 = vadd.f32 %v1644_v48, %v560_v44 }
 0x162   : > { %v540_v58 = vmul.f32 %v1380_v37, %v1607_v47  ;;  %v584_v61 = vadd.f32 %v1644_v48, %v561_v53 }
 0x163   : > { %v593_v35 = vpack.c.bf16 %v583_v57, %v582_v17  ;;  %v562_v59 = vmul.f32 %v1636_v33, %v539_v56 }
 0x164   : > { %v1382_v60 = vpop.eup %1381  ;;  %v563_v63 = vmul.f32 %v1636_v33, %v540_v58 }
 0x165   : > { %v541_v62 = vmul.f32 %v1382_v60, %v1610_v25  ;;  %1296 = vmatmul.mubr.msk.bf16.gmra.mrb[8].mxu0 %vm332_vm0, %v593_v35  ;;  %1316 = vmatmul.mubr.msk.bf16.gmra.mrb[8].mxu1 %vm332_vm0, %v593_v35  ;;  %v585_v21 = vadd.f32 %v1644_v48, %v562_v59 }
 0x166   : > { %v586_v45 = vadd.f32 %v1644_v48, %v563_v63 }
 0x167   : > { %v594_v2 = vpack.c.bf16 %v585_v21, %v584_v61  ;;  %v564_v47 = vmul.f32 %v1636_v33, %v541_v62 }
 0x169   : > { %1299 = vmatprep.mubr.msk.bf16.mxu0 %vm332_vm0, %v594_v2  ;;  %1319 = vmatprep.mubr.msk.bf16.mxu1 %vm332_vm0, %v594_v2  ;;  %v587_v3 = vadd.f32 %v1644_v48, %v564_v47 }
 0x16b   : > { %v595_v25 = vpack.c.bf16 %v587_v3, %v586_v45 }
 0x16d   : > { %1300 = vmatmul.mubr.msk.bf16.gmra.mrb[12].mxu0 %vm332_vm0, %v595_v25  ;;  %1320 = vmatmul.mubr.msk.bf16.gmra.mrb[12].mxu1 %vm332_vm0, %v595_v25 }
 0x228   : > { %v1289_v4 = vpop.f32.mrb[0].mxu0  ;;  %v1309_v33 = vpop.f32.mrb[0].mxu1 }
 0x229   : > { %v735_v5 = vmul.f32 0.5100697, %v1289_v4  ;;  %v1249_v6 = vpack.c.bf16 %v1309_v33, %v1309_v33  ;;  %v670_v54 = vpop.f32.mrb[1].mxu0  ;;  %v880_v48 = vpop.f32.mrb[1].mxu1 }
 0x22a   : > { %v733_v7 = vmul.f32 0.5100697, %v670_v54  ;;  %v1247_v8 = vpack.c.bf16 %v880_v48, %v880_v48  ;;  %v1290_v9 = vpop.f32.mrb[2].mxu0  ;;  %v1310_v12 = vpop.f32.mrb[2].mxu1 }
 0x22b   : > { %v1233_v13 = vpack.c.bf16 %v735_v5, %v735_v5  ;;  %1010 = vst.msk [vmem:[%s1710_s20 + $0x8] sm:$0xf] %vm1007_vm1, %v1249_v6  ;;  %v736_v14 = vmul.f32 0.5100697, %v1290_v9  ;;  %v1250_v15 = vpack.c.bf16 %v1310_v12, %v1310_v12  ;;  %v673_v55 = vpop.f32.mrb[3].mxu0  ;;  %v883_v18 = vpop.f32.mrb[3].mxu1 }
 0x22c   : > { %v1231_v19 = vpack.c.bf16 %v733_v7, %v733_v7  ;;  %1008 = vst.msk [vmem:[%s1710_s20] sm:$0xf] %vm1007_vm1, %v1247_v8  ;;  %v734_v22 = vmul.f32 0.5100697, %v673_v55  ;;  %v1248_v16 = vpack.c.bf16 %v883_v18, %v883_v18 }
 0x22d   : > { %816 = vst.msk [vmem:[%s1715_s27 + $0x8] sm:$0xf] %vm813_vm2, %v1233_v13  ;;  %v1234_v26 = vpack.c.bf16 %v736_v14, %v736_v14 }
 0x22e   : > { %1011 = vst.msk [vmem:[%s1710_s20 + $0xc] sm:$0xf] %vm1007_vm1, %v1250_v15  ;;  %v1232_v27 = vpack.c.bf16 %v734_v22, %v734_v22  ;;  %1009 = vst.msk [vmem:[%s1710_s20 + $0x4] sm:$0xf] %vm1007_vm1, %v1248_v16 }
 0x22f   : > { %814 = vst.msk [vmem:[%s1715_s27] sm:$0xf] %vm813_vm2, %v1231_v19  ;;  %817 = vst.msk [vmem:[%s1715_s27 + $0xc] sm:$0xf] %vm813_vm2, %v1234_v26 }
 0x230   : > { %815 = vst.msk [vmem:[%s1715_s27 + $0x4] sm:$0xf] %vm813_vm2, %v1232_v27  ;;  %v1293_v0 = vpop.f32.mrb[4].mxu0  ;;  %v1313_v30 = vpop.f32.mrb[4].mxu1 }
 0x231   : > { %v739_v31 = vmul.f32 0.5100697, %v1293_v0  ;;  %v1253_v32 = vpack.c.bf16 %v1313_v30, %v1313_v30  ;;  %v686_v34 = vpop.f32.mrb[5].mxu0  ;;  %v896_v20 = vpop.f32.mrb[5].mxu1 }
 0x232   : > { %v737_v38 = vmul.f32 0.5100697, %v686_v34  ;;  %v1251_v39 = vpack.c.bf16 %v896_v20, %v896_v20  ;;  %v1294_v1 = vpop.f32.mrb[6].mxu0  ;;  %v1314_v40 = vpop.f32.mrb[6].mxu1 }
 0x233   : > { %v1237_v41 = vpack.c.bf16 %v739_v31, %v739_v31  ;;  %1014 = vst.msk [vmem:[%s1710_s20 + $0x18] sm:$0xf] %vm1007_vm1, %v1253_v32  ;;  %v740_v42 = vmul.f32 0.5100697, %v1294_v1  ;;  %v1254_v10 = vpack.c.bf16 %v1314_v40, %v1314_v40  ;;  %v689_v43 = vpop.f32.mrb[7].mxu0  ;;  %v899_v36 = vpop.f32.mrb[7].mxu1 }
 0x234   : > { %v1235_v46 = vpack.c.bf16 %v737_v38, %v737_v38  ;;  %1012 = vst.msk [vmem:[%s1710_s20 + $0x10] sm:$0xf] %vm1007_vm1, %v1251_v39  ;;  %v738_v24 = vmul.f32 0.5100697, %v689_v43  ;;  %v1252_v49 = vpack.c.bf16 %v899_v36, %v899_v36 }
 0x235   : > { %820 = vst.msk [vmem:[%s1715_s27 + $0x18] sm:$0xf] %vm813_vm2, %v1237_v41  ;;  %v1238_v50 = vpack.c.bf16 %v740_v42, %v740_v42 }
 0x236   : > { %1015 = vst.msk [vmem:[%s1710_s20 + $0x1c] sm:$0xf] %vm1007_vm1, %v1254_v10  ;;  %v1236_v11 = vpack.c.bf16 %v738_v24, %v738_v24  ;;  %1013 = vst.msk [vmem:[%s1710_s20 + $0x14] sm:$0xf] %vm1007_vm1, %v1252_v49 }
 0x237   : > { %818 = vst.msk [vmem:[%s1715_s27 + $0x10] sm:$0xf] %vm813_vm2, %v1235_v46  ;;  %821 = vst.msk [vmem:[%s1715_s27 + $0x1c] sm:$0xf] %vm813_vm2, %v1238_v50 }
 0x238   : > { %819 = vst.msk [vmem:[%s1715_s27 + $0x14] sm:$0xf] %vm813_vm2, %v1236_v11  ;;  %v1297_v51 = vpop.f32.mrb[8].mxu0  ;;  %v1317_v52 = vpop.f32.mrb[8].mxu1 }
 0x239   : > { %v743_v23 = vmul.f32 0.5100697, %v1297_v51  ;;  %v1257_v28 = vpack.c.bf16 %v1317_v52, %v1317_v52  ;;  %v702_v44 = vpop.f32.mrb[9].mxu0  ;;  %v912_v29 = vpop.f32.mrb[9].mxu1 }
 0x23a   : > { %v741_v53 = vmul.f32 0.5100697, %v702_v44  ;;  %v1255_v37 = vpack.c.bf16 %v912_v29, %v912_v29  ;;  %v1298_v56 = vpop.f32.mrb[10].mxu0  ;;  %v1318_v17 = vpop.f32.mrb[10].mxu1 }
 0x23b   : > { %v1241_v57 = vpack.c.bf16 %v743_v23, %v743_v23  ;;  %1018 = vst.msk [vmem:[%s1710_s20 + $0x28] sm:$0xf] %vm1007_vm1, %v1257_v28  ;;  %v744_v58 = vmul.f32 0.5100697, %v1298_v56  ;;  %v1258_v35 = vpack.c.bf16 %v1318_v17, %v1318_v17  ;;  %v705_v59 = vpop.f32.mrb[11].mxu0  ;;  %v915_v60 = vpop.f32.mrb[11].mxu1 }
 0x23c   : > { %v1239_v61 = vpack.c.bf16 %v741_v53, %v741_v53  ;;  %1016 = vst.msk [vmem:[%s1710_s20 + $0x20] sm:$0xf] %vm1007_vm1, %v1255_v37  ;;  %v742_v62 = vmul.f32 0.5100697, %v705_v59  ;;  %v1256_v21 = vpack.c.bf16 %v915_v60, %v915_v60 }
 0x23d   : > { %824 = vst.msk [vmem:[%s1715_s27 + $0x28] sm:$0xf] %vm813_vm2, %v1241_v57  ;;  %v1242_v63 = vpack.c.bf16 %v744_v58, %v744_v58 }
 0x23e   : > { %1019 = vst.msk [vmem:[%s1710_s20 + $0x2c] sm:$0xf] %vm1007_vm1, %v1258_v35  ;;  %v1240_v2 = vpack.c.bf16 %v742_v62, %v742_v62  ;;  %1017 = vst.msk [vmem:[%s1710_s20 + $0x24] sm:$0xf] %vm1007_vm1, %v1256_v21 }
 0x23f   : > { %822 = vst.msk [vmem:[%s1715_s27 + $0x20] sm:$0xf] %vm813_vm2, %v1239_v61  ;;  %825 = vst.msk [vmem:[%s1715_s27 + $0x2c] sm:$0xf] %vm813_vm2, %v1242_v63 }
 0x240   : > { %823 = vst.msk [vmem:[%s1715_s27 + $0x24] sm:$0xf] %vm813_vm2, %v1240_v2  ;;  %v1301_v47 = vpop.f32.mrb[12].mxu0  ;;  %v1321_v45 = vpop.f32.mrb[12].mxu1 }
 0x241   : > { %v747_v3 = vmul.f32 0.5100697, %v1301_v47  ;;  %v1261_v25 = vpack.c.bf16 %v1321_v45, %v1321_v45  ;;  %v718_v4 = vpop.f32.mrb[13].mxu0  ;;  %v928_v33 = vpop.f32.mrb[13].mxu1 }
 0x242   : > { %v745_v5 = vmul.f32 0.5100697, %v718_v4  ;;  %v1259_v6 = vpack.c.bf16 %v928_v33, %v928_v33  ;;  %v1302_v54 = vpop.f32.mrb[14].mxu0  ;;  %v1322_v48 = vpop.f32.mrb[14].mxu1 }
 0x243   : > { %v1245_v7 = vpack.c.bf16 %v747_v3, %v747_v3  ;;  %1022 = vst.msk [vmem:[%s1710_s20 + $0x38] sm:$0xf] %vm1007_vm1, %v1261_v25  ;;  %v748_v8 = vmul.f32 0.5100697, %v1302_v54  ;;  %v1262_v9 = vpack.c.bf16 %v1322_v48, %v1322_v48  ;;  %v721_v12 = vpop.f32.mrb[15].mxu0  ;;  %v931_v13 = vpop.f32.mrb[15].mxu1 }
 0x244   : > { %v1243_v14 = vpack.c.bf16 %v745_v5, %v745_v5  ;;  %1020 = vst.msk [vmem:[%s1710_s20 + $0x30] sm:$0xf] %vm1007_vm1, %v1259_v6  ;;  %v746_v15 = vmul.f32 0.5100697, %v721_v12  ;;  %v1260_v55 = vpack.c.bf16 %v931_v13, %v931_v13 }
 0x245   : > { %828 = vst.msk [vmem:[%s1715_s27 + $0x38] sm:$0xf] %vm813_vm2, %v1245_v7  ;;  %v1246_v18 = vpack.c.bf16 %v748_v8, %v748_v8 }
 0x246   : > { %1023 = vst.msk [vmem:[%s1710_s20 + $0x3c] sm:$0xf] %vm1007_vm1, %v1262_v9  ;;  %v1244_v19 = vpack.c.bf16 %v746_v15, %v746_v15  ;;  %1021 = vst.msk [vmem:[%s1710_s20 + $0x34] sm:$0xf] %vm1007_vm1, %v1260_v55 }
 0x247   : > { %826 = vst.msk [vmem:[%s1715_s27 + $0x30] sm:$0xf] %vm813_vm2, %v1243_v14  ;;  %829 = vst.msk [vmem:[%s1715_s27 + $0x3c] sm:$0xf] %vm813_vm2, %v1246_v18 }
 0x248   : > { %827 = vst.msk [vmem:[%s1715_s27 + $0x34] sm:$0xf] %vm813_vm2, %v1244_v19 }
 0x249 PF: > { %s17_s23 = sadd.s32 1, %s1405_s23   ;;  %s1797_s21 = smov %s1401_s22 }
 0x24a   : > { %p14_p5 = scmp.ge.s32.totalorder %s17_s23, 4   ;;  %s1798_s22 = smov %s1800_s24 }
 0x24c   :  { %16 = sbr.rel (!%p14_p5) target bundleno = 2 (0x2), region = 82 }

</bundles_post_ra>
